<compile_context>
chip_gen: v7x
topology: tpu7x:2x2x1
jax: 0.10.0
libtpu: 0.0.40
codegen_flags: <defaults>
</compile_context>

<pallas_src>
import functools

import jax
import jax.numpy as jnp
from jax import lax
from jax.experimental import pallas as pl
from jax.experimental.pallas import tpu as pltpu


# -----------------------------------------------------------------------------
# Fused kernel: one grid step == one SelfDecoderBlock; last step also runs the
# final projection + softmax.  Activation is resident in VMEM scratch.
# -----------------------------------------------------------------------------
def _fused_decoder_kernel(x_ref, wqkv_ref, wo_ref, wf_ref, out_ref, act_ref,
                          *, heads, d_model):
    b = pl.program_id(0)
    hd = heads * d_model

    # Block 0: seed the resident activation with the positional embeddings.
    @pl.when(b == 0)
    def _():
        act_ref[...] = x_ref[...].astype(jnp.float32)

    # ---- multi-head self-attention for block `b` -----------------------------
    x_bf = act_ref[...].astype(jnp.bfloat16)                          # [L, E]
    # Single fused QKV projection: [L, E] @ [E, 3*H*D] -> [L, 3*H*D].
    qkv = jnp.dot(x_bf, wqkv_ref[0], preferred_element_type=jnp.float32)
    # Fold the score scale into q once ([L, H*D]) instead of scaling [L, L].
    # TODO(synk): reference divides scores by d (== d_model), not sqrt(d_model).
    q = qkv[:, 0:hd] * (1.0 / float(d_model))
    k = qkv[:, hd:2 * hd]
    v = qkv[:, 2 * hd:3 * hd]

    # concat(head_0 .. head_{H-1}) @ Wo  ==  sum_h head_h @ Wo[h]
    y = jnp.zeros(act_ref.shape, jnp.float32)
    for h in range(heads):                                            # static unroll
        lo, hi = h * d_model, (h + 1) * d_model
        qh = q[:, lo:hi].astype(jnp.bfloat16)
        kh = k[:, lo:hi].astype(jnp.bfloat16)
        vh = v[:, lo:hi].astype(jnp.bfloat16)
        # Q K^T without materializing a transpose: contract on D of both sides.
        s = lax.dot_general(qh, kh, (((1,), (1,)), ((), ())),
                            preferred_element_type=jnp.float32)       # [L, L]
        s = s - jnp.max(s, axis=-1, keepdims=True)
        p = jnp.exp(s)
        p = p * pl.reciprocal(jnp.sum(p, axis=-1, keepdims=True), approx=True)
        o_h = jnp.dot(p.astype(jnp.bfloat16), vh,
                      preferred_element_type=jnp.float32)             # [L, D]
        y = y + jnp.dot(o_h.astype(jnp.bfloat16), wo_ref[0, h],
                        preferred_element_type=jnp.float32)           # [L, E]
    act_ref[...] = y

    # ---- final projection + softmax(dim=1), last block only ------------------
    @pl.when(b == pl.num_programs(0) - 1)
    def _():
        logits = jnp.dot(wf_ref[...], act_ref[...].astype(jnp.bfloat16),
                         preferred_element_type=jnp.float32)          # [C, E]
        m = jnp.max(logits, axis=1, keepdims=True)
        e = jnp.exp(logits - m)
        out_ref[...] = e / jnp.sum(e, axis=1, keepdims=True)          # exact norm


# -----------------------------------------------------------------------------
# Wrapper: one pallas_call for the whole forward.
# -----------------------------------------------------------------------------
def self_decoder_forward(inputs, params, *, heads, d_model, num_blocks):
    # Positional embedding only depends on input *shape* (reference semantics);
    # it is a cheap one-time host-side jnp computation fed into the kernel.
    embeddings = fixed_pos_embed(inputs.shape, d_model)               # [L, E]
    L, E = embeddings.shape
    wqkv, wo, wf = params["wqkv"], params["wo"], params["finallinear"]
    C = wf.shape[0]
    hd = heads * d_model

    kernel = functools.partial(_fused_decoder_kernel,
                               heads=heads, d_model=d_model)
    return pl.pallas_call(
        kernel,
        out_shape=jax.ShapeDtypeStruct((C, E), jnp.float32),
        grid_spec=pltpu.PrefetchScalarGridSpec(
            num_scalar_prefetch=0,
            grid=(num_blocks,),
            in_specs=[
                pl.BlockSpec((L, E), lambda b: (0, 0)),               # pos-embed
                pl.BlockSpec((1, E, 3 * hd), lambda b: (b, 0, 0)),    # fused QKV
                pl.BlockSpec((1, heads, d_model, E),
                             lambda b: (b, 0, 0, 0)),                 # out proj
                pl.BlockSpec((C, L), lambda b: (0, 0)),               # finallinear
            ],
            out_specs=pl.BlockSpec((C, E), lambda b: (0, 0)),
            scratch_shapes=[pltpu.VMEM((L, E), jnp.float32)],         # resident act
        ),
        compiler_params=pltpu.CompilerParams(
            dimension_semantics=("arbitrary",)),
    )(embeddings, wqkv, wo, wf)


# -----------------------------------------------------------------------------
# Model glue (plain JAX)
# -----------------------------------------------------------------------------
def fixed_pos_embed(shape, d_model):
    """Exact formula from the reference:
       new[i, pos] = sin((pos/10000)**(2*i) / d_model)  if i even
                     cos((pos/10000)**(2*i) / d_model)  otherwise."""
    dim0, dim1 = shape
    i = jnp.arange(dim0, dtype=jnp.float32)[:, None]
    pos = jnp.arange(dim1, dtype=jnp.float32)[None, :]
    arg = (pos / 10000.0) ** (2.0 * i) / float(d_model)
    return jnp.where((jnp.arange(dim0)[:, None] % 2) == 0,
                     jnp.sin(arg), jnp.cos(arg)).astype(jnp.float32)


def init_params(key, *, input_length, embedding_size, d_model, heads,
                num_blocks, num_classes):
    # TODO(synk): reference inits all weights to zeros (degenerate); use small
    # deterministic random values instead so the kernel computes real work.
    hd = heads * d_model
    key, kq, ko, kf = jax.random.split(key, 4)
    # Per-head Q/K/V weights fused along the lane dim: [B, E, 3*H*D] laid out
    # as [ q_h0..q_h{H-1} | k_h0.. | v_h0.. ].
    wqkv = 0.02 * jax.random.normal(
        kq, (num_blocks, embedding_size, 3 * hd), jnp.float32)
    # Output projection split per head: concat(heads) @ Wo == sum_h head_h@Wo[h].
    wo = 0.02 * jax.random.normal(
        ko, (num_blocks, heads, d_model, embedding_size), jnp.float32)
    # `finallinear @ embeddings` with embeddings [L, E] requires [C, L].
    wf = 0.02 * jax.random.normal(
        kf, (num_classes, input_length), jnp.float32)
    # bf16 storage: half the weight DMA/VMEM bytes, bf16 MXU operands,
    # f32 accumulation inside the kernel.
    return {"wqkv": wqkv.astype(jnp.bfloat16),
            "wo": wo.astype(jnp.bfloat16),
            "finallinear": wf.astype(jnp.bfloat16)}


# -----------------------------------------------------------------------------
if __name__ == "__main__":
    # Small shapes consistent with the module's forward.
    INPUT_LENGTH = 8      # seq_len
    EMBEDDING_SIZE = 32
    D_MODEL = 16          # per-head projection width
    HEADS = 2
    NUM_BLOCKS = 2
    NUM_CLASSES = 2
    # TODO(synk): for production shapes, pad E and heads*D to multiples of 128
    # (lane-dense stores) and tile the query dim with a "parallel" grid axis
    # (v7x dual TensorCore / 64 MiB VMEM budgeting).

    key = jax.random.PRNGKey(0)
    key, k_in = jax.random.split(key)
    inputs = jax.random.normal(k_in, (INPUT_LENGTH, EMBEDDING_SIZE), jnp.float32)

    params = init_params(key,
                         input_length=INPUT_LENGTH,
                         embedding_size=EMBEDDING_SIZE,
                         d_model=D_MODEL,
                         heads=HEADS,
                         num_blocks=NUM_BLOCKS,
                         num_classes=NUM_CLASSES)

    out = self_decoder_forward(inputs, params,
                               heads=HEADS, d_model=D_MODEL,
                               num_blocks=NUM_BLOCKS)
    out = jax.block_until_ready(out)

    assert out.shape == (NUM_CLASSES, EMBEDDING_SIZE)
    # rows of softmax(dim=1) should sum to 1
    assert bool(jnp.allclose(jnp.sum(out, axis=1), 1.0, atol=1e-4))
    print("KERNEL_OK")
</pallas_src>

<mosaic_0001>
module attributes {stable_mosaic.version = 11 : i64} {
  func.func @_fused_decoder_kernel(%arg0: i32, %arg1: memref<8x32xf32, #tpu.memory_space<vmem>>, %arg2: memref<1x32x96xbf16, #tpu.memory_space<vmem>>, %arg3: memref<1x2x16x32xbf16, #tpu.memory_space<vmem>>, %arg4: memref<2x8xbf16, #tpu.memory_space<vmem>>, %arg5: memref<2x32xf32, #tpu.memory_space<vmem>>, %arg6: memref<8x32xf32, #tpu.memory_space<vmem>>) attributes {dimension_semantics = [#tpu.dimension_semantics<arbitrary>], iteration_bounds = array<i64: 2>, scalar_prefetch = 0 : i64, scratch_operands = 1 : i64, tpu.core_type = #tpu.core_type<tc>, window_params = [{pipeline_mode = #tpu.pipeline_mode<synchronous>, transform_indices = @transform_0, window_bounds = array<i64: 8, 32>}, {transform_indices = @transform_1, window_bounds = array<i64: 1, 32, 96>}, {transform_indices = @transform_2, window_bounds = array<i64: 1, 2, 16, 32>}, {pipeline_mode = #tpu.pipeline_mode<synchronous>, transform_indices = @transform_3, window_bounds = array<i64: 2, 8>}, {pipeline_mode = #tpu.pipeline_mode<synchronous>, transform_indices = @transform_4, window_bounds = array<i64: 2, 32>}]} {
    %c0_i32 = arith.constant 0 : i32
    %0 = arith.cmpi eq, %arg0, %c0_i32 : i32
    %1 = arith.extui %0 : i1 to i32
    %c0_i32_0 = arith.constant 0 : i32
    %2 = arith.cmpi ne, %1, %c0_i32_0 : i32
    scf.if %2 {
      %c0_27 = arith.constant 0 : index
      %c0_28 = arith.constant 0 : index
      %66 = vector.load %arg1[%c0_27, %c0_28] : memref<8x32xf32, #tpu.memory_space<vmem>>, vector<8x32xf32>
      %c0_29 = arith.constant 0 : index
      %c0_30 = arith.constant 0 : index
      %67 = vector.load %arg6[%c0_29, %c0_30] : memref<8x32xf32, #tpu.memory_space<vmem>>, vector<8x32xf32>
      tpu.vector_store %arg6[%c0_29, %c0_30], %66 {strides = array<i32>} : memref<8x32xf32, #tpu.memory_space<vmem>>, vector<8x32xf32>,
    } else {
    }
    %c0 = arith.constant 0 : index
    %c0_1 = arith.constant 0 : index
    %3 = vector.load %arg6[%c0, %c0_1] : memref<8x32xf32, #tpu.memory_space<vmem>>, vector<8x32xf32>
    %4 = arith.truncf %3 : vector<8x32xf32> to vector<8x32xbf16>
    %c0_2 = arith.constant 0 : index
    %c0_3 = arith.constant 0 : index
    %c0_4 = arith.constant 0 : index
    %5 = vector.load %arg2[%c0_2, %c0_3, %c0_4] : memref<1x32x96xbf16, #tpu.memory_space<vmem>>, vector<1x32x96xbf16>
    %6 = vector.shape_cast %5 : vector<1x32x96xbf16> to vector<32x96xbf16>
    %cst = arith.constant dense<0.000000e+00> : vector<8x96xf32>
    %7 = tpu.matmul %4, %6, %cst {dimension_numbers = #tpu.dot_dimension_numbers<[1], [0], [0], [1], [0, 0, 1, 1], [], []>} : vector<8x32xbf16>, vector<32x96xbf16>, vector<8x96xf32> -> vector<8x96xf32>
    %8 = vector.extract_strided_slice %7 {offsets = [0, 0], sizes = [8, 32], strides = [1, 1]} : vector<8x96xf32> to vector<8x32xf32>
    %cst_5 = arith.constant 6.250000e-02 : f32
    %9 = vector.broadcast %cst_5 : f32 to vector<8x32xf32>
    %10 = arith.mulf %8, %9 : vector<8x32xf32>
    %11 = vector.extract_strided_slice %7 {offsets = [0, 32], sizes = [8, 32], strides = [1, 1]} : vector<8x96xf32> to vector<8x32xf32>
    %12 = vector.extract_strided_slice %7 {offsets = [0, 64], sizes = [8, 32], strides = [1, 1]} : vector<8x96xf32> to vector<8x32xf32>
    %cst_6 = arith.constant 0.000000e+00 : f32
    %13 = vector.broadcast %cst_6 : f32 to vector<8x32xf32>
    %14 = vector.extract_strided_slice %10 {offsets = [0, 0], sizes = [8, 16], strides = [1, 1]} : vector<8x32xf32> to vector<8x16xf32>
    %15 = arith.truncf %14 : vector<8x16xf32> to vector<8x16xbf16>
    %16 = vector.extract_strided_slice %11 {offsets = [0, 0], sizes = [8, 16], strides = [1, 1]} : vector<8x32xf32> to vector<8x16xf32>
    %17 = arith.truncf %16 : vector<8x16xf32> to vector<8x16xbf16>
    %18 = vector.extract_strided_slice %12 {offsets = [0, 0], sizes = [8, 16], strides = [1, 1]} : vector<8x32xf32> to vector<8x16xf32>
    %19 = arith.truncf %18 : vector<8x16xf32> to vector<8x16xbf16>
    %cst_7 = arith.constant dense<0.000000e+00> : vector<8x8xf32>
    %20 = tpu.matmul %15, %17, %cst_7 {dimension_numbers = #tpu.dot_dimension_numbers<[1], [1], [0], [0], [0, 0, 1, 0], [], []>} : vector<8x16xbf16>, vector<8x16xbf16>, vector<8x8xf32> -> vector<8x8xf32>
    %cst_8 = arith.constant dense<0xFF800000> : vector<8xf32>
    %21 = vector.multi_reduction <maximumf>, %20, %cst_8 [1] : vector<8x8xf32> to vector<8xf32>
    %22 = vector.shape_cast %21 : vector<8xf32> to vector<8x1xf32>
    %23 = vector.broadcast %22 : vector<8x1xf32> to vector<8x8xf32>
    %24 = arith.subf %20, %23 : vector<8x8xf32>
    %25 = math.exp %24 : vector<8x8xf32>
    %cst_9 = arith.constant dense<0.000000e+00> : vector<8xf32>
    %26 = vector.multi_reduction <add>, %25, %cst_9 [1] : vector<8x8xf32> to vector<8xf32>
    %27 = vector.shape_cast %26 : vector<8xf32> to vector<8x1xf32>
    %28 = tpu.reciprocal %27 {approx = true} : vector<8x1xf32> -> vector<8x1xf32>
    %29 = vector.broadcast %28 : vector<8x1xf32> to vector<8x8xf32>
    %30 = arith.mulf %25, %29 : vector<8x8xf32>
    %31 = arith.truncf %30 : vector<8x8xf32> to vector<8x8xbf16>
    %cst_10 = arith.constant dense<0.000000e+00> : vector<8x16xf32>
    %32 = tpu.matmul %31, %19, %cst_10 {dimension_numbers = #tpu.dot_dimension_numbers<[1], [0], [0], [1], [0, 0, 1, 1], [], []>} : vector<8x8xbf16>, vector<8x16xbf16>, vector<8x16xf32> -> vector<8x16xf32>
    %33 = arith.truncf %32 : vector<8x16xf32> to vector<8x16xbf16>
    %c0_11 = arith.constant 0 : index
    %c0_12 = arith.constant 0 : index
    %c0_13 = arith.constant 0 : index
    %c0_14 = arith.constant 0 : index
    %34 = vector.load %arg3[%c0_11, %c0_12, %c0_13, %c0_14] : memref<1x2x16x32xbf16, #tpu.memory_space<vmem>>, vector<1x1x16x32xbf16>
    %35 = vector.shape_cast %34 : vector<1x1x16x32xbf16> to vector<16x32xbf16>
    %cst_15 = arith.constant dense<0.000000e+00> : vector<8x32xf32>
    %36 = tpu.matmul %33, %35, %cst_15 {dimension_numbers = #tpu.dot_dimension_numbers<[1], [0], [0], [1], [0, 0, 1, 1], [], []>} : vector<8x16xbf16>, vector<16x32xbf16>, vector<8x32xf32> -> vector<8x32xf32>
    %37 = arith.addf %13, %36 : vector<8x32xf32>
    %38 = vector.extract_strided_slice %10 {offsets = [0, 16], sizes = [8, 16], strides = [1, 1]} : vector<8x32xf32> to vector<8x16xf32>
    %39 = arith.truncf %38 : vector<8x16xf32> to vector<8x16xbf16>
    %40 = vector.extract_strided_slice %11 {offsets = [0, 16], sizes = [8, 16], strides = [1, 1]} : vector<8x32xf32> to vector<8x16xf32>
    %41 = arith.truncf %40 : vector<8x16xf32> to vector<8x16xbf16>
    %42 = vector.extract_strided_slice %12 {offsets = [0, 16], sizes = [8, 16], strides = [1, 1]} : vector<8x32xf32> to vector<8x16xf32>
    %43 = arith.truncf %42 : vector<8x16xf32> to vector<8x16xbf16>
    %cst_16 = arith.constant dense<0.000000e+00> : vector<8x8xf32>
    %44 = tpu.matmul %39, %41, %cst_16 {dimension_numbers = #tpu.dot_dimension_numbers<[1], [1], [0], [0], [0, 0, 1, 0], [], []>} : vector<8x16xbf16>, vector<8x16xbf16>, vector<8x8xf32> -> vector<8x8xf32>
    %cst_17 = arith.constant dense<0xFF800000> : vector<8xf32>
    %45 = vector.multi_reduction <maximumf>, %44, %cst_17 [1] : vector<8x8xf32> to vector<8xf32>
    %46 = vector.shape_cast %45 : vector<8xf32> to vector<8x1xf32>
    %47 = vector.broadcast %46 : vector<8x1xf32> to vector<8x8xf32>
    %48 = arith.subf %44, %47 : vector<8x8xf32>
    %49 = math.exp %48 : vector<8x8xf32>
    %cst_18 = arith.constant dense<0.000000e+00> : vector<8xf32>
    %50 = vector.multi_reduction <add>, %49, %cst_18 [1] : vector<8x8xf32> to vector<8xf32>
    %51 = vector.shape_cast %50 : vector<8xf32> to vector<8x1xf32>
    %52 = tpu.reciprocal %51 {approx = true} : vector<8x1xf32> -> vector<8x1xf32>
    %53 = vector.broadcast %52 : vector<8x1xf32> to vector<8x8xf32>
    %54 = arith.mulf %49, %53 : vector<8x8xf32>
    %55 = arith.truncf %54 : vector<8x8xf32> to vector<8x8xbf16>
    %cst_19 = arith.constant dense<0.000000e+00> : vector<8x16xf32>
    %56 = tpu.matmul %55, %43, %cst_19 {dimension_numbers = #tpu.dot_dimension_numbers<[1], [0], [0], [1], [0, 0, 1, 1], [], []>} : vector<8x8xbf16>, vector<8x16xbf16>, vector<8x16xf32> -> vector<8x16xf32>
    %57 = arith.truncf %56 : vector<8x16xf32> to vector<8x16xbf16>
    %c0_20 = arith.constant 0 : index
    %c1 = arith.constant 1 : index
    %c0_21 = arith.constant 0 : index
    %c0_22 = arith.constant 0 : index
    %58 = vector.load %arg3[%c0_20, %c1, %c0_21, %c0_22] : memref<1x2x16x32xbf16, #tpu.memory_space<vmem>>, vector<1x1x16x32xbf16>
    %59 = vector.shape_cast %58 : vector<1x1x16x32xbf16> to vector<16x32xbf16>
    %cst_23 = arith.constant dense<0.000000e+00> : vector<8x32xf32>
    %60 = tpu.matmul %57, %59, %cst_23 {dimension_numbers = #tpu.dot_dimension_numbers<[1], [0], [0], [1], [0, 0, 1, 1], [], []>} : vector<8x16xbf16>, vector<16x32xbf16>, vector<8x32xf32> -> vector<8x32xf32>
    %61 = arith.addf %37, %60 : vector<8x32xf32>
    %c0_24 = arith.constant 0 : index
    %c0_25 = arith.constant 0 : index
    %62 = vector.load %arg6[%c0_24, %c0_25] : memref<8x32xf32, #tpu.memory_space<vmem>>, vector<8x32xf32>
    tpu.vector_store %arg6[%c0_24, %c0_25], %61 {strides = array<i32>} : memref<8x32xf32, #tpu.memory_space<vmem>>, vector<8x32xf32>,
    %c1_i32 = arith.constant 1 : i32
    %63 = arith.cmpi eq, %arg0, %c1_i32 : i32
    %64 = arith.extui %63 : i1 to i32
    %c0_i32_26 = arith.constant 0 : i32
    %65 = arith.cmpi ne, %64, %c0_i32_26 : i32
    scf.if %65 {
      %c0_27 = arith.constant 0 : index
      %c0_28 = arith.constant 0 : index
      %66 = vector.load %arg4[%c0_27, %c0_28] : memref<2x8xbf16, #tpu.memory_space<vmem>>, vector<2x8xbf16>
      %c0_29 = arith.constant 0 : index
      %c0_30 = arith.constant 0 : index
      %67 = vector.load %arg6[%c0_29, %c0_30] : memref<8x32xf32, #tpu.memory_space<vmem>>, vector<8x32xf32>
      %68 = arith.truncf %67 : vector<8x32xf32> to vector<8x32xbf16>
      %cst_31 = arith.constant dense<0.000000e+00> : vector<2x32xf32>
      %69 = tpu.matmul %66, %68, %cst_31 {dimension_numbers = #tpu.dot_dimension_numbers<[1], [0], [0], [1], [0, 0, 1, 1], [], []>} : vector<2x8xbf16>, vector<8x32xbf16>, vector<2x32xf32> -> vector<2x32xf32>
      %cst_32 = arith.constant dense<0xFF800000> : vector<2xf32>
      %70 = vector.multi_reduction <maximumf>, %69, %cst_32 [1] : vector<2x32xf32> to vector<2xf32>
      %71 = vector.shape_cast %70 : vector<2xf32> to vector<2x1xf32>
      %72 = vector.broadcast %71 : vector<2x1xf32> to vector<2x32xf32>
      %73 = arith.subf %69, %72 : vector<2x32xf32>
      %74 = math.exp %73 : vector<2x32xf32>
      %cst_33 = arith.constant dense<0.000000e+00> : vector<2xf32>
      %75 = vector.multi_reduction <add>, %74, %cst_33 [1] : vector<2x32xf32> to vector<2xf32>
      %76 = vector.shape_cast %75 : vector<2xf32> to vector<2x1xf32>
      %77 = vector.broadcast %76 : vector<2x1xf32> to vector<2x32xf32>
      %78 = arith.divf %74, %77 : vector<2x32xf32>
      %c0_34 = arith.constant 0 : index
      %c0_35 = arith.constant 0 : index
      %79 = vector.load %arg5[%c0_34, %c0_35] : memref<2x32xf32, #tpu.memory_space<vmem>>, vector<2x32xf32>
      tpu.vector_store %arg5[%c0_34, %c0_35], %78 {strides = array<i32>} : memref<2x32xf32, #tpu.memory_space<vmem>>, vector<2x32xf32>,
    } else {
    }
    return
  }
  func.func @transform_0(%arg0: i32) -> (i32, i32) {
    %c0_i32 = arith.constant 0 : i32
    %c0_i32_0 = arith.constant 0 : i32
    %c0_i32_1 = arith.constant 0 : i32
    return %c0_i32, %c0_i32_0 : i32, i32
  }
  func.func @transform_1(%arg0: i32) -> (i32, i32, i32) {
    %c0_i32 = arith.constant 0 : i32
    %c0_i32_0 = arith.constant 0 : i32
    %c0_i32_1 = arith.constant 0 : i32
    return %arg0, %c0_i32, %c0_i32_0 : i32, i32, i32
  }
  func.func @transform_2(%arg0: i32) -> (i32, i32, i32, i32) {
    %c0_i32 = arith.constant 0 : i32
    %c0_i32_0 = arith.constant 0 : i32
    %c0_i32_1 = arith.constant 0 : i32
    %c0_i32_2 = arith.constant 0 : i32
    return %arg0, %c0_i32, %c0_i32_0, %c0_i32_1 : i32, i32, i32, i32
  }
  func.func @transform_3(%arg0: i32) -> (i32, i32) {
    %c0_i32 = arith.constant 0 : i32
    %c0_i32_0 = arith.constant 0 : i32
    %c0_i32_1 = arith.constant 0 : i32
    return %c0_i32, %c0_i32_0 : i32, i32
  }
  func.func @transform_4(%arg0: i32) -> (i32, i32) {
    %c0_i32 = arith.constant 0 : i32
    %c0_i32_0 = arith.constant 0 : i32
    %c0_i32_1 = arith.constant 0 : i32
    return %c0_i32, %c0_i32_0 : i32, i32
  }
}

</mosaic_0001>

<bundles_post_ra>
// kernel: tpu_custom_call.1
= control target key start
LH: loop header
LB: loop body
LE: loop exit
PB: predicated region body
PF: predicated region fallthrough
CT: control target
= control target key end

     0   :  { %9 = vsyncpa [#allocation4], 0  ;;  %s1479_s0 = inlined_call_operand.hbm [shape: f32[8,32], index: 0, kind: input, shape index: {}]   ;;  %s1480_s1 = inlined_call_operand.hbm [shape: bf16[2,32,96], index: 1, kind: input, shape index: {}]   ;;  %s1481_s2 = inlined_call_operand.hbm [shape: bf16[2,2,16,32], index: 2, kind: input, shape index: {}]   ;;  %s1482_s3 = inlined_call_operand.vmem [shape: bf16[2,8], index: 3, kind: input, shape index: {}]   ;;  %s1483_s4 = inlined_call_operand.hbm [shape: f32[2,32], index: 4, kind: output, shape index: {}]  }
   0x1   :  { %10 = vsyncpa [#allocation7], 0 }
   0x2   :  { %12 = vsyncpa [#allocation7 + $0x1], 0 }
   0x3   :  { %13 = vsyncpa [#allocation5], 0  ;;  %s1205_s15 = smov 0   ;;  %s1207_s16 = smov 0  }
   0x4   :  { %s1209_s17 = smov 0   ;;  %s1211_s18 = smov 0  }
   0x5 LB: > { %s1226_s19 = sadd.s32 1, %s1163_s18   ;;  %s47_s20 = sadd.s32 1, %s1159_s17  ;;  %s1163_s18 = sphi %s1211_s18, %s1501_s18   ;;  %s1159_s17 = sphi %s1209_s17, %s1500_s17   ;;  %s1155_s16 = sphi %s1207_s16, %s1499_s16   ;;  %s1151_s15 = sphi %s1205_s15, %s1498_s15  }
   0x6   : > { %s44_s21 = ssub.s32 %s1163_s18, %s1226_s19  ;;  %p54_p0 = scmp.ne.s32.totalorder %s1159_s17, %s1155_s16 }
   0x7   : > { %p45_p1 = scmp.eq.s32.totalorder %s44_s21, 0  ;;  %p55_p2 = scmp.eq.s32.totalorder %s1163_s18, 0 }
   0x8   : > { %p942_p3 = scmp.lt.s32.totalorder %s1163_s18, 2  ;;  %s166_s23 = sand.u32 1, %s1163_s18  }
   0x9   : > { %s1236_s22 = scalar_select %p45_p1, %s1159_s17, %s47_s20  }
   0xa   : > { %p56_p4 = por %p55_p2, %p54_p0  ;;  %s168_s24 = sand.u32 1, %s1159_s17  }
   0xb   : > { %s1240_s25 = sshll.u32 %s168_s24, 4  ;;  %s845_s26 = sshll.u32 %s1163_s18, 8 }
   0xc   : > { %s1248_s29 = scalar_lea.hbm %s1480_s1, %s845_s26  ;;  %s170_s30 = scalar_lea.vmem [#allocation6], %s1240_s25 }
   0xd   : > { %s177_s5 = sshll.u32 %s170_s30, 4  ;;  %p1251_p5 = pnand %p942_p3, %p56_p4  ;;  %s1255_s5 = int_to_ptr.vmem [resolvable:$true] %s177_s5 }
   0xe   : > { %s1257_s7 = scalar_lea.sflag [#allocation7], %s166_s23  ;;  %s1007_s8 = scalar_lea.hbm %s1248_s29, 256 }
   0xf   : > { %p1008_p6 = scmp.ne.s32.totalorder %s1248_s29, %s1007_s8  ;;  %p1009_p7 = pneg %p1251_p5 }
  0x10   : > { %s1012_s11 = scalar_lea.hbm %s1480_s1, 512  ;;  %p1013_p10 = scmp.lt.u32.totalorder %s1248_s29, %s1480_s1 }
  0x11   : > { %p1010_p8 = pnand %p1009_p7, %p1008_p6  ;;  %p1014_p11 = scmp.lt.u32.totalorder %s1012_s11, %s1007_s8 }
  0x12   : > { %p1016_p13 = scmp.lt.u32.totalorder %s1007_s8, %s1248_s29 }
  0x13   : > { %p1011_p9 = pneg %p1010_p8  ;;  %p1015_p12 = por %p1014_p11, %p1013_p10 }
  0x15   : > { %p1017_p0 = por %p1016_p13, %p1015_p12 }
  0x17   : > { %p1018_p1 = pnand %p1017_p0, %p1011_p9 }
  0x19   : > { %1021 = shalt.err (!%p1018_p1)
}
  0x1a   : > { %s1022_s14 = scalar_lea.vmem %s1255_s5, 256  ;;  %s1165_s20 = smov [#allocation6]  }
  0x1b   : > { %p1023_p2 = scmp.ne.s32.totalorder %s1255_s5, %s1022_s14  ;;  %s1027_s21 = sshll.u32 %s1165_s20, 4  ;;  %s1028_s21 = int_to_ptr.vmem [resolvable:$false] %s1027_s21 }
  0x1c   : > { %s1029_s23 = scalar_lea.vmem %s1028_s21, 512  ;;  %p1030_p6 = scmp.lt.s32.totalorder %s1255_s5, %s1028_s21 }
  0x1d   : > { %p1025_p3 = pnand %p1023_p2, %p1009_p7  ;;  %p1031_p8 = scmp.lt.s32.totalorder %s1029_s23, %s1022_s14 }
  0x1f   : > { %p1026_p4 = pneg %p1025_p3  ;;  %p1032_p10 = por %p1031_p8, %p1030_p6 }
  0x21   : > { %p1033_p11 = pnand %p1032_p10, %p1026_p4 }
  0x23   : > { %1036 = shalt.err (!%p1033_p11)
}
  0x24   : > { %s1166_s24 = smov 64   ;;  %s1167_s27 = smov 4  }
  0x25   : > { %937 = dma.hbm_to_vmem [thread:$0]  (!%p1251_p5), %s1248_s29, 256, %s1255_s5, %s1257_s7, %s1166_s24, %s1166_s24, %s1167_s27  }
  0x26   : > { %s1293_s8 = scalar_lea.hbm %s1481_s2, %s845_s26  ;;  %s191_s9 = scalar_lea.vmem [#allocation8], %s1240_s25 }
  0x27   : > { %s198_s10 = sshll.u32 %s191_s9, 4  ;;  %s1297_s11 = sadd.s32 4294967295, %s1163_s18   ;;  %s1311_s10 = int_to_ptr.vmem [resolvable:$true] %s198_s10 }
  0x28   : > { %p60_p9 = scmp.ne.s32.totalorder %s1155_s16, %s1151_s15  ;;  %p1484_p12 = scmp.eq.s32.totalorder %s1297_s11, 0 }
  0x29   : > { %p812_p13 = scmp.ge.s32.totalorder %s1163_s18, 1  ;;  %p139_p0 = scmp.lt.s32.totalorder %s1163_s18, 3 }
  0x2a   : > { %p1307_p2 = por %p1484_p12, %p60_p9  ;;  %s1168_s29 = smov [#allocation3]  }
  0x2b   : > { %p1313_p3 = pnand %p812_p13, %p139_p0  ;;  %s1317_s15 = sshll.u32 %s1168_s29, 4  ;;  %s153_s15 = int_to_ptr.vmem [resolvable:$true] %s1317_s15 }
  0x2c   : > { %s1488_s26 = scalar_select %p1307_p2, 1, 0 }
  0x2d   : > { %s1489_s25 = scalar_select %p1313_p3, 1, 0 }
  0x2e   : > { %s1037_s18 = scalar_lea.hbm %s1293_s8, 256  ;;  %s1042_s13 = scalar_lea.hbm %s1481_s2, 512 }
  0x2f   : > { %p1038_p6 = scmp.ne.s32.totalorder %s1293_s8, %s1037_s18  ;;  %p1043_p11 = scmp.lt.u32.totalorder %s1293_s8, %s1481_s2 }
  0x30   : > { %p1044_p9 = scmp.lt.u32.totalorder %s1042_s13, %s1037_s18  ;;  %p1046_p0 = scmp.lt.u32.totalorder %s1037_s18, %s1293_s8 }
  0x31   : > { %p1040_p8 = pnand %p1038_p6, %p1009_p7 }
  0x32   : > { %p1045_p13 = por %p1044_p9, %p1043_p11 }
  0x33   : > { %p1041_p10 = pneg %p1040_p8 }
  0x34   : > { %p1047_p1 = por %p1046_p0, %p1045_p13 }
  0x36   : > { %p1048_p12 = pnand %p1047_p1, %p1041_p10 }
  0x38   : > { %1051 = shalt.err (!%p1048_p12)
}
  0x39   : > { %s1052_s21 = scalar_lea.vmem %s1311_s10, 256  ;;  %s1169_s23 = smov [#allocation8]  }
  0x3a   : > { %p1053_p6 = scmp.ne.s32.totalorder %s1311_s10, %s1052_s21  ;;  %s1057_s28 = sshll.u32 %s1169_s23, 4  ;;  %s1058_s28 = int_to_ptr.vmem [resolvable:$false] %s1057_s28 }
  0x3b   : > { %s1059_s30 = scalar_lea.vmem %s1058_s28, 512  ;;  %p1060_p2 = scmp.lt.s32.totalorder %s1311_s10, %s1058_s28 }
  0x3c   : > { %p1055_p8 = pnand %p1053_p6, %p1009_p7  ;;  %p1061_p11 = scmp.lt.s32.totalorder %s1059_s30, %s1052_s21 }
  0x3e   : > { %p1056_p4 = pneg %p1055_p8  ;;  %p1062_p9 = por %p1061_p11, %p1060_p2 }
  0x40   : > { %p1063_p13 = pnand %p1062_p9, %p1056_p4 }
  0x42   : > { %1066 = shalt.err (!%p1063_p13)
}
  0x43   : > { %940 = dma.hbm_to_vmem [thread:$0]  (!%p1251_p5), %s1293_s8, 256, %s1311_s10, %s1257_s7, %s1166_s24, %s1166_s24, %s1167_s27  }
  0x44   : > { %p1490_p7 = scmp.eq.s32.totalorder %s1297_s11, 0  ;;  %p1491_p12 = pneg %p1313_p3 }
  0x45   : > { %s1067_s18 = scalar_lea.hbm %s1479_s0, 128 }
  0x46   : > { %p1354_p1 = pnand %p1491_p12, %p1490_p7  ;;  %p1068_p2 = scmp.ne.s32.totalorder %s1479_s0, %s1067_s18 }
  0x47   : > { %p1074_p0 = scmp.lt.u32.totalorder %s1067_s18, %s1479_s0 }
  0x48   : > { %p1069_p4 = pneg %p1354_p1 }
  0x4a   : > { %p1070_p5 = pnand %p1069_p4, %p1068_p2 }
  0x4c   : > { %p1071_p10 = pneg %p1070_p5 }
  0x4e   : > { %p1076_p6 = pnand %p1074_p0, %p1071_p10 }
  0x50   : > { %1079 = shalt.err (!%p1076_p6)
}
  0x51   : > { %s1080_s27 = scalar_lea.vmem %s153_s15, 128  ;;  %p1088_p13 = scmp.lt.s32.totalorder %s153_s15, %s153_s15 }
  0x52   : > { %p1081_p8 = scmp.ne.s32.totalorder %s153_s15, %s1080_s27  ;;  %p1089_p7 = scmp.lt.s32.totalorder %s1080_s27, %s1080_s27 }
  0x54   : > { %p1083_p11 = pnand %p1081_p8, %p1069_p4  ;;  %p1090_p12 = por %p1089_p7, %p1088_p13 }
  0x56   : > { %p1084_p9 = pneg %p1083_p11 }
  0x58   : > { %p1091_p3 = pnand %p1090_p12, %p1084_p9 }
  0x5a   : > { %1094 = shalt.err (!%p1091_p3)
}
  0x5b   : > { %933 = dma.hbm_to_vmem [thread:$0]  (!%p1354_p1), %s1479_s0, 128, %s153_s15, [#allocation4]  }
  0x5c   : > { %p1493_p2 = scmp.ne.s32.totalorder %s1489_s25, 0 }
  0x5d   : > { %p1494_p5 = scmp.eq.s32.totalorder (!%p1493_p2), %s1297_s11, 0 }
  0x5e   : > { %210 = sbr.rel (%p1493_p2) target bundleno = 2002 (0x7d2), region = 36 }
  0x65   : > { %1138 = dma.done.wait (%p1494_p5), [#allocation4], 128   ;;  %p1495_p4 = pmov %p1494_p5 }
  0x66   : > { %s216_s13 = sand.u32 1, %s1297_s11   ;;  %s218_s14 = sand.u32 1, %s1155_s16  }
  0x67   : > { %1140 = vsyncadd (%p1495_p4), [#allocation4], 4294967168  ;;  %s1382_s20 = sshll.u32 %s218_s14, 4  ;;  %s217_s21 = scalar_lea.sflag [#allocation7], %s216_s13 }
  0x68   : > { %s220_s23 = scalar_lea.vmem [#allocation6], %s1382_s20  ;;  %p1496_p3 = scmp.ne.s32.totalorder %s1488_s26, 0 }
  0x6a   : > { %1142 = dma.done.wait (%p1496_p3), %s217_s21, 512  }
  0x6b   : > { %1144 = vsyncadd (%p1496_p3), %s217_s21, 4294966784  ;;  %s229_s25 = scalar_lea.vmem [#allocation8], %s1382_s20  ;;  %p1497_p1 = scmp.ne.s32.totalorder %s1297_s11, 0 }
  0x6c   : > { %v259_v0 = vld [vmem:[#allocation3] sm:$0xff] (!%p1497_p1)  ;;  %vm260_vm0 = vcmask (!%p1497_p1), 261120  }
  0x6d   : > { %258 = sbr.rel (%p1497_p1) target bundleno = 116 (0x74), region = 52  ;;  %261 = vst.msk [vmem:[#allocation2] sm:$0xff] (!%p1497_p1), %vm260_vm0, %v259_v0 }
  0x74 PF: > { %v991_v1 = vld [vmem:[%s220_s23] sm:$0xff]   ;;  %v1170_v2 = vmov 0.0   ;;  %v992_v3 = vld [vmem:[%s220_s23 + $0x8] sm:$0xff]   ;;  %vm1171_vm1 = vmmov 0   ;;  %vm280_vm2 = vcmask 261120   ;;  %s1172_s26 = smov 96  }
  0x75   : > { %864 = vmatprep.subr.bf16.mxu0 %v1170_v2  ;;  %872 = vmatprep.subr.bf16.mxu1 %v1170_v2  ;;  %v262_v4 = vld [vmem:[#allocation2] sm:$0xff]  ;;  %s1173_s15 = smov 112   ;;  %s1174_s28 = smov 80   ;;  %vm330_vm3 = vcmask 130048   ;;  %vm377_vm4 = vcmask 64512   ;;  %vm395_vm5 = vcmask 1043456  }
  0x76   : > { %865 = vmatpush3.bf16.msra.mxu0 %v991_v1  ;;  %868 = vmatprep.mubr.msk.bf16.mxu0 %vm1171_vm1, %v1170_v2  ;;  %v263_v5 = vpack.c.bf16 %v262_v4, %v262_v4  ;;  %s1175_s30 = smov 64   ;;  %s1176_s9 = smov 48   ;;  %v993_v50 = vld [vmem:[%s229_s25 + $0x8] sm:$0xff]   ;;  %v994_v56 = vld [vmem:[%s229_s25] sm:$0xff]  }
  0x77   : > { %866 = vmatprep.subr.bf16.mxu0 %v1170_v2  ;;  %874 = vmatprep.mubr.msk.bf16.mxu1 %vm1171_vm1, %v1170_v2  ;;  %p839_p10 = scmp.ne.s32.totalorder %s1297_s11, 1 }
  0x78   : > { %v1177_v4 = vmov (!%p839_p10), 0.0   ;;  %vm1178_vm6 = vmmov (!%p839_p10), 0   ;;  %vm709_vm7 = vcmask (!%p839_p10), 254976  }
  0x7a   : > { %867 = vmatpush3.bf16.msra.mxu0 %v992_v3 }
  0x7b   : > { %878 = vmatprep.subr.bf16.mxu0 %v1170_v2 }
  0x7d   : > { %869 = vmatmul.mubr.msk.bf16.vlgmr.msra.gmra.mrb[0].mxu0 %vm280_vm2, %v263_v5 }
  0x7e   : > { %880 = vmatprep.mubr.msk.bf16.mxu0 %vm1171_vm1, %v1170_v2 }
 0x150   : > { %v318_v6 = vpop.f32.mrb[0].mxu0 }
 0x151   : > { %v324_v7 = vmul.f32 0.0625, %v318_v6  ;;  %v326_v8 = vpack.c.bf16 %v318_v6, %v318_v6  ;;  %v870_v9 = vpop.f32.mrb[1].mxu0  ;;  %v660_v6 = vld [vmem:[%s1482_s3] sm:$0x1] (!%p839_p10) }
 0x152   : > { %v321_v10 = vpop.f32.mrb[2].mxu0 }
 0x153   : > { %328 = vrot.lane.b32.xlu0 %v326_v8, %s1172_s26  ;;  %v871_v11 = vpop.f32.mrb[3].mxu0  ;;  %v325_v12 = vpack.c.bf16 %v324_v7, %v324_v7 }
 0x155   : > { %443 = vrot.lane.b32.xlu1 %v325_v12, %s1173_s15 }
 0x157   : > { %445 = vrot.lane.b32.xlu0 %v326_v8, %s1174_s28 }
 0x1c5   : > { %v329_v13 = vpop.permute.xlu0 %328 }
 0x1c6   : > { %v335_v14 = vsel %vm330_vm3, %v329_v13, 0 }
 0x1c7   : > { %873 = vmatpush3.bf16.xpose.msra.mxu1 %v335_v14  ;;  %v444_v17 = vpop.permute.xlu1 %443 }
 0x1c8   : > { %884 = vmatprep.subr.bf16.mxu1 %v1170_v2 }
 0x1c9   : > { %v446_v15 = vpop.permute.xlu0 %445 }
 0x1ca   : > { %v451_v16 = vsel %vm330_vm3, %v446_v15, 0 }
 0x1ce   : > { %875 = vmatmul.mubr.msk.bf16.vlgmr.msra.gmra.mrb[0].mxu1 %vm330_vm3, %v325_v12 }
 0x1cf   : > { %885 = vmatpush3.bf16.xpose.msra.mxu1 %v451_v16  ;;  %886 = vmatprep.mubr.msk.bf16.mxu1 %vm1171_vm1, %v1170_v2 }
 0x1d0   : > { %896 = vmatprep.subr.bf16.mxu1 %v1170_v2 }
 0x1d6   : > { %887 = vmatmul.mubr.msk.bf16.vlgmr.msra.gmra.mrb[4].mxu1 %vm330_vm3, %v444_v17 }
 0x1d7   : > { %898 = vmatprep.mubr.msk.bf16.mxu1 %vm1171_vm1, %v1170_v2  ;;  %897 = vmatpush3.bf16.msra.mxu1 %v993_v50 }
 0x1d8   : > { %902 = vmatprep.subr.bf16.mxu1 %v1170_v2 }
 0x2a1   : > { %v371_v18 = vpop.f32.mrb[0].mxu1 }
 0x2a2   : > { %v876_v19 = vpop.f32.mrb[1].mxu1  ;;  %v378_v20 = vsel %vm377_vm4, %v371_v18, -inf }
 0x2a3   : > { %379 = vmax.xlane.f32.xlu1 %v378_v20  ;;  %v374_v21 = vpop.f32.mrb[2].mxu1 }
 0x2a4   : > { %v877_v22 = vpop.f32.mrb[3].mxu1 }
 0x2a9   : > { %v487_v23 = vpop.f32.mrb[4].mxu1 }
 0x2aa   : > { %v888_v24 = vpop.f32.mrb[5].mxu1  ;;  %v493_v25 = vsel %vm377_vm4, %v487_v23, -inf }
 0x2ab   : > { %494 = vmax.xlane.f32.xlu0 %v493_v25  ;;  %v490_v26 = vpop.f32.mrb[6].mxu1 }
 0x2ac   : > { %v889_v27 = vpop.f32.mrb[7].mxu1 }
 0x330   : > { %v380_v28 = vpop.xlane.xlu1 %379 }
 0x331   : > { %v381_v29 = vsub.f32 %v371_v18, %v380_v28 }
 0x333   : > { %v382_v30 = vmul.f32 1.442695, %v381_v29 }
 0x335   : > { %995 = vpow2.f32 %v382_v30 }
 0x338   : > { %v495_v31 = vpop.xlane.xlu0 %494 }
 0x339   : > { %v496_v32 = vsub.f32 %v487_v23, %v495_v31 }
 0x33b   : > { %v497_v33 = vmul.f32 1.442695, %v496_v32 }
 0x33d   : > { %997 = vpow2.f32 %v497_v33 }
 0x33f   : > { %v996_v34 = vpop.eup %995 }
 0x340   : > { %v384_v35 = vsel %vm377_vm4, %v996_v34, 0.0 }
 0x341   : > { %385 = vadd.xlane.f32.xlu0 %v384_v35 }
 0x347   : > { %v998_v36 = vpop.eup %997 }
 0x348   : > { %v499_v37 = vsel %vm377_vm4, %v998_v36, 0.0 }
 0x349   : > { %500 = vadd.xlane.f32.xlu1 %v499_v37 }
 0x357   : > { %390 = vrot.lane.b32.xlu0 %v326_v8, %s1175_s30 }
 0x35a   : > { %505 = vrot.lane.b32.xlu1 %v326_v8, %s1176_s9 }
 0x3ce   : > { %v386_v38 = vpop.xlane.xlu0 %385 }
 0x3cf   : > { %999 = vrcp.f32 %v386_v38 }
 0x3d2   : > { %v391_v39 = vpop.permute.xlu0 %390 }
 0x3d3   : > { %v397_v40 = vsel %vm395_vm5, %v391_v39, 0 }
 0x3d4   : > { %879 = vmatpush3.bf16.msra.mxu0 %v397_v40 }
 0x3d5   : > { %890 = vmatprep.subr.bf16.mxu0 %v1170_v2 }
 0x3d6   : > { %v501_v41 = vpop.xlane.xlu1 %500 }
 0x3d7   : > { %1001 = vrcp.f32 %v501_v41 }
 0x3d9   : > { %v1000_v42 = vpop.eup %999 }
 0x3da   : > { %v388_v43 = vmul.f32 %v1000_v42, %v996_v34  ;;  %v506_v44 = vpop.permute.xlu1 %505 }
 0x3db   : > { %v511_v46 = vsel %vm395_vm5, %v506_v44, 0 }
 0x3dc   : > { %v389_v45 = vpack.c.bf16 %v388_v43, %v388_v43 }
 0x3de   : > { %881 = vmatmul.mubr.msk.bf16.vlgmr.msra.gmra.mrb[4].mxu0 %vm377_vm4, %v389_v45 }
 0x3df   : > { %891 = vmatpush3.bf16.msra.mxu0 %v511_v46  ;;  %892 = vmatprep.mubr.msk.bf16.mxu0 %vm1171_vm1, %v1170_v2 }
 0x3e0   : > { %908 = vmatprep.subr.bf16.mxu0 (!%p839_p10), %v1177_v4 }
 0x3e1   : > { %v1002_v47 = vpop.eup %1001 }
 0x3e2   : > { %v503_v48 = vmul.f32 %v1002_v47, %v998_v36 }
 0x3e4   : > { %v504_v49 = vpack.c.bf16 %v503_v48, %v503_v48 }
 0x3e6   : > { %893 = vmatmul.mubr.msk.bf16.vlgmr.msra.gmra.mrb[8].mxu0 %vm377_vm4, %v504_v49 }
 0x3e7   : > { %910 = vmatprep.mubr.msk.bf16.mxu0 (!%p839_p10), %vm1178_vm6, %v1177_v4 }
 0x4b1   : > { %v433_v51 = vpop.f32.mrb[4].mxu0 }
 0x4b2   : > { %v882_v52 = vpop.f32.mrb[5].mxu0  ;;  %v439_v61 = vpack.c.bf16 %v433_v51, %v433_v51 }
 0x4b3   : > { %v436_v53 = vpop.f32.mrb[6].mxu0 }
 0x4b4   : > { %v883_v54 = vpop.f32.mrb[7].mxu0 }
 0x4b9   : > { %v547_v55 = vpop.f32.mrb[8].mxu0 }
 0x4ba   : > { %v553_v57 = vpack.c.bf16 %v547_v55, %v547_v55  ;;  %v894_v58 = vpop.f32.mrb[9].mxu0 }
 0x4bb   : > { %v550_v59 = vpop.f32.mrb[10].mxu0 }
 0x4bc   : > { %v895_v60 = vpop.f32.mrb[11].mxu0  ;;  %899 = vmatmul.mubr.msk.bf16.vlgmr.msra.gmra.mrb[8].mxu1 %vm330_vm3, %v553_v57 }
 0x4bd   : > { %903 = vmatpush3.bf16.msra.mxu1 %v994_v56  ;;  %904 = vmatprep.mubr.msk.bf16.mxu1 %vm1171_vm1, %v1170_v2 }
 0x4c8   : > { %905 = vmatmul.mubr.msk.bf16.vlgmr.msra.gmra.mrb[8].mxu1 %vm330_vm3, %v439_v61 }
 0x598   : > { %659 = sbr.rel (%p839_p10) target bundleno = 1977 (0x7b9), region = 56 }
 0x59b   : > { %v649_v62 = vpop.f32.mrb[8].mxu1 }
 0x59c   : > { %655 = vst.msk [vmem:[#allocation2] sm:$0xff] %vm280_vm2, %v649_v62  ;;  %v906_v63 = vpop.f32.mrb[9].mxu1 }
 0x59d   : > { %v652_v0 = vpop.f32.mrb[10].mxu1 }
 0x59e   : > { %v907_v1 = vpop.f32.mrb[11].mxu1 }
 0x5a3   : > { %v661_v3 = vld [vmem:[#allocation2] sm:$0xff] }
 0x5a4   : > { %v662_v5 = vpack.c.bf16 %v661_v3, %v661_v3 }
 0x5a6   : > { %v667_v2 = vsel %vm395_vm5, %v662_v5, 0 }
 0x5a7   : > { %909 = vmatpush3.bf16.msra.mxu0 %v667_v2 }
 0x5aa   : > { %911 = vmatmul.mubr.msk.bf16.vlgmr.msra.gmra.mrb[0].mxu0 %vm377_vm4, %v660_v6 }
 0x67d   : > { %v703_v7 = vpop.f32.mrb[0].mxu0 }
 0x67e   : > { %v912_v8 = vpop.f32.mrb[1].mxu0  ;;  %v710_v9 = vsel %vm709_vm7, %v703_v7, -inf }
 0x67f   : > { %711 = vmax.xlane.f32.xlu0 %v710_v9  ;;  %v706_v10 = vpop.f32.mrb[2].mxu0 }
 0x680   : > { %v913_v11 = vpop.f32.mrb[3].mxu0 }
 0x70c   : > { %v712_v12 = vpop.xlane.xlu0 %711 }
 0x70d   : > { %v713_v13 = vsub.f32 %v703_v7, %v712_v12 }
 0x70f   : > { %v714_v14 = vmul.f32 1.442695, %v713_v13 }
 0x711   : > { %1003 = vpow2.f32 %v714_v14 }
 0x71b   : > { %v1004_v15 = vpop.eup %1003 }
 0x71c   : > { %v716_v16 = vsel %vm709_vm7, %v1004_v15, 0.0 }
 0x71d   : > { %717 = vadd.xlane.f32.xlu0 %v716_v16 }
 0x7aa   : > { %v718_v17 = vpop.xlane.xlu0 %717 }
 0x7ab   : > { %1005 = vrcp.f32 %v718_v17 }
 0x7b5   : > { %v1006_v18 = vpop.eup %1005 }
 0x7b6   : > { %v720_v19 = vmul.f32 %v1006_v18, %v1004_v15 }
 0x7b8   : > { %721 = vst.msk [vmem:[#allocation9] sm:$0x3] %vm709_vm7, %v720_v19 }
 0x7b9 PF: > { %p944_p0 = scmp.eq.s32.totalorder %s1297_s11, 1  ;;  %s1179_s18 = smov [#allocation9]  }
 0x7ba   : > { %s729_s5 = sshll.u32 %s1179_s18, 4  ;;  %s730_s5 = int_to_ptr.vmem [resolvable:$true] %s729_s5 }
 0x7bb   : > { %s1095_s12 = scalar_lea.vmem %s730_s5, 32  ;;  %p1102_p9 = scmp.lt.s32.totalorder %s730_s5, %s730_s5 }
 0x7bc   : > { %p1096_p6 = scmp.ne.s32.totalorder %s730_s5, %s1095_s12  ;;  %p1103_p13 = scmp.lt.s32.totalorder %s1095_s12, %s1095_s12 }
 0x7be   : > { %p1097_p8 = pnand %p1096_p6, %p944_p0  ;;  %p1104_p7 = por %p1103_p13, %p1102_p9 }
 0x7c0   : > { %p1098_p11 = pneg %p1097_p8 }
 0x7c2   : > { %p1105_p12 = pnand %p1104_p7, %p1098_p11 }
 0x7c4   : > { %1108 = shalt.err (!%p1105_p12)
}
 0x7c5   : > { %s1109_s27 = scalar_lea.hbm %s1483_s4, 32 }
 0x7c6   : > { %p1110_p2 = scmp.ne.s32.totalorder %s1483_s4, %s1109_s27  ;;  %p1115_p3 = scmp.lt.u32.totalorder %s1109_s27, %s1483_s4 }
 0x7c8   : > { %p1111_p5 = pnand %p1110_p2, %p944_p0 }
 0x7ca   : > { %p1112_p4 = pneg %p1111_p5 }
 0x7cc   : > { %p1117_p1 = pnand %p1115_p3, %p1112_p4 }
 0x7ce   : > { %1120 = shalt.err (!%p1117_p1)
}
 0x7cf   : > { %927 = dma.vmem_to_hbm [thread:$0]  (%p944_p0), %s730_s5, 32, %s1483_s4, [#allocation5]  }
 0x7d0   : > { %1146 = dma.done.wait (%p944_p0), [#allocation5], 32  }
 0x7d1   : > { %1148 = vsyncadd (%p944_p0), [#allocation5], 4294967264 }
 0x7d2 PF: > { %p16_p10 = scmp.ge.s32.totalorder %s1226_s19, 4   ;;  %s1498_s15 = smov %s1155_s16 }
 0x7d3   : > { %s1499_s16 = smov %s1159_s17  ;;  %s1500_s17 = smov %s1236_s22 }
 0x7d4   : > { %s1501_s18 = smov %s1226_s19  ;;  %18 = sbr.rel (!%p16_p10) target bundleno = 5 (0x5), region = 98 }
 0x7db   :  { %742 = vsyncpa [#allocation4], 1 }
 0x7dc   :  { %744 = vsyncpa [#allocation4 + $0x1], 1 }
 0x7dd   :  { %745 = vsyncpa [#allocation7], 1 }
 0x7de   :  { %747 = vsyncpa [#allocation7 + $0x1], 1 }
 0x7df   :  { %748 = vsyncpa [#allocation5], 1 }
 0x7e0   :  { %750 = vsyncpa [#allocation5 + $0x1], 1 }

</bundles_post_ra>
